<compile_context>
chip_gen: v7x
topology: tpu7x:2x2x1
jax: 0.10.0
libtpu: 0.0.40
codegen_flags: <defaults>
</compile_context>

<pallas_src>
import functools

import jax
import jax.numpy as jnp
from jax import lax
from jax.experimental import pallas as pl
from jax.experimental.pallas import tpu as pltpu

LANES = 128            # lane width of the 2-D slab view
MAX_TILE_ROWS = 4096   # rows per grid step -> (4096, 128) f32 block = 2 MiB
NUM_CORE_SPLITS = 2    # leading "parallel" grid axis (both TCs on v7x)


def _nan_mse_kernel(o_ref, t_ref, sum_ref, cnt_ref, *,
                    n_main, tile_rows, inner, full_blocks, any_partial):
    c = pl.program_id(0)       # core-split index ("parallel")
    i = pl.program_id(1)       # reduction step   ("arbitrary")

    # Per-core partial accumulators live in the resident (1,8,128) output
    # blocks (same output block index across the inner axis).
    @pl.when(i == 0)
    def _():
        sum_ref[...] = jnp.zeros_like(sum_ref)
        cnt_ref[...] = jnp.zeros_like(cnt_ref)

    t = t_ref[...].astype(jnp.float32)
    o = o_ref[...].astype(jnp.float32)
    valid_t = t == t            # ~isnan(target), single VPU compare

    folds = tile_rows // 8

    def accumulate(valid):
        diff = jnp.where(valid, o - t, jnp.float32(0.0))
        sq = diff * diff
        # Fold (tile_rows, 128) -> (1, 8, 128): per-vreg VALU adds, no XLU.
        sum_ref[...] += sq.reshape(folds, 8, LANES).sum(axis=0, keepdims=True)
        cnt_ref[...] += valid.astype(jnp.int32).reshape(
            folds, 8, LANES).sum(axis=0, keepdims=True)

    bk = c * inner + i          # intended (unclamped) global block index

    if any_partial:
        # Fast path: fully-covered blocks need no index masking.
        @pl.when(bk < full_blocks)
        def _():
            accumulate(valid_t)

        # Slow path: the last (partial) block and any overrun block of the
        # 2-way core split; mask by local flat index against the remaining
        # element count. TODO(synk): int32 math caps n_main at < 2^31 elems.
        @pl.when(bk >= full_blocks)
        def _():
            row = lax.broadcasted_iota(jnp.int32, t.shape, 0)
            lane = lax.broadcasted_iota(jnp.int32, t.shape, 1)
            local = row * LANES + lane
            rem = n_main - bk * (tile_rows * LANES)   # may be <= 0
            accumulate(jnp.logical_and(valid_t, local < rem))
    else:
        accumulate(valid_t)


def _masked_sums_jax(o, t):
    """Plain-JAX (sum of squared diffs, valid count) for tiny/tail pieces."""
    o = o.astype(jnp.float32)
    t = t.astype(jnp.float32)
    valid = t == t
    diff = jnp.where(valid, o - t, jnp.float32(0.0))
    return jnp.sum(diff * diff), jnp.sum(valid.astype(jnp.float32))


def nan_mse_loss(output, target):
    """Masked MSE: mean of (output - target)^2 over entries where target is not NaN."""
    ovec = jnp.ravel(output)   # keep original dtype; f32 upcast happens in-kernel
    tvec = jnp.ravel(target)
    n = ovec.shape[0]
    if n == 0:
        return jnp.float32(jnp.nan)   # MSELoss over an empty selection -> NaN

    rows = n // LANES
    if rows < 8:
        # Too small for even one (8,128) grid step; plain JAX is optimal.
        s, cnt = _masked_sums_jax(ovec, tvec)
        return s / cnt

    n_main = rows * LANES
    # <128-element tail handled in plain JAX -- avoids padded HBM copies of
    # both inputs (jnp.pad would ~triple HBM traffic for unaligned sizes).
    tail_sum, tail_cnt = _masked_sums_jax(ovec[n_main:], tvec[n_main:])

    o2d = ovec[:n_main].reshape(rows, LANES)
    t2d = tvec[:n_main].reshape(rows, LANES)

    # 8-aligned tile that never exceeds the row count; last block may be
    # partial (masked in-kernel).
    tile_rows = min(MAX_TILE_ROWS, (rows // 8) * 8)
    grid_r = pl.cdiv(rows, tile_rows)
    splits = NUM_CORE_SPLITS if grid_r >= NUM_CORE_SPLITS else 1
    inner = pl.cdiv(grid_r, splits)
    block_elems = tile_rows * LANES
    full_blocks = n_main // block_elems
    any_partial = (n_main % block_elems != 0) or (splits * inner != grid_r)

    kernel = functools.partial(
        _nan_mse_kernel, n_main=n_main, tile_rows=tile_rows, inner=inner,
        full_blocks=full_blocks, any_partial=any_partial)

    last_block = grid_r - 1

    def in_map(c, i):
        # Clamp so the overrun step of an odd block count never issues an
        # out-of-bounds DMA; its contribution is masked out in-kernel.
        return (jnp.minimum(c * inner + i, last_block), 0)

    psum, pcnt = pl.pallas_call(
        kernel,
        out_shape=(jax.ShapeDtypeStruct((splits, 8, LANES), jnp.float32),
                   jax.ShapeDtypeStruct((splits, 8, LANES), jnp.int32)),
        grid_spec=pltpu.PrefetchScalarGridSpec(
            num_scalar_prefetch=0,
            grid=(splits, inner),
            in_specs=[
                pl.BlockSpec((tile_rows, LANES), in_map),
                pl.BlockSpec((tile_rows, LANES), in_map),
            ],
            out_specs=[
                pl.BlockSpec((1, 8, LANES), lambda c, i: (c, 0, 0)),
                pl.BlockSpec((1, 8, LANES), lambda c, i: (c, 0, 0)),
            ],
        ),
        compiler_params=pltpu.CompilerParams(
            dimension_semantics=("parallel", "arbitrary"),
            vmem_limit_bytes=48 * 1024 * 1024,   # headroom for 4096-row f32 tiles
        ),
    )(o2d, t2d)

    total = jnp.sum(psum) + tail_sum
    count = jnp.sum(pcnt).astype(jnp.float32) + tail_cnt
    return total / count   # 0/0 -> NaN matches MSELoss over empty selection


if __name__ == "__main__":
    key = jax.random.PRNGKey(0)
    k1, k2, k3, k4, k5, k6 = jax.random.split(key, 6)

    def reference(output, target):
        t = jnp.ravel(target).astype(jnp.float32)
        o = jnp.ravel(output).astype(jnp.float32)
        valid = ~jnp.isnan(t)
        diff = jnp.where(valid, o - jnp.nan_to_num(t), 0.0)
        return jnp.sum(diff * diff) / jnp.sum(valid.astype(jnp.float32))

    # Test 1: batch_size x D (module docstring), lane-aligned flat length.
    B, D = 2, 1024
    out1 = jax.random.uniform(k1, (B, D), dtype=jnp.float32)
    tgt1 = jax.random.uniform(k2, (B, D), dtype=jnp.float32)
    tgt1 = jnp.where(jax.random.uniform(k3, (B, D)) < 0.2, jnp.nan, tgt1)
    loss1 = jax.block_until_ready(nan_mse_loss(out1, tgt1))
    ref1 = reference(out1, tgt1)
    assert jnp.allclose(loss1, ref1, rtol=1e-5, atol=1e-6), (loss1, ref1)

    # Test 2: non-lane-aligned flat length (exercises core split, partial-block
    # masking, and the plain-JAX tail path).
    B2, D2 = 7, 173
    out2 = jax.random.uniform(k4, (B2, D2), dtype=jnp.float32)
    tgt2 = jax.random.uniform(k5, (B2, D2), dtype=jnp.float32)
    tgt2 = jnp.where(jax.random.uniform(k6, (B2, D2)) < 0.2, jnp.nan, tgt2)
    loss2 = jax.block_until_ready(nan_mse_loss(out2, tgt2))
    ref2 = reference(out2, tgt2)
    assert jnp.allclose(loss2, ref2, rtol=1e-5, atol=1e-6), (loss2, ref2)

    print("KERNEL_OK")
</pallas_src>

<mosaic_0001>
module attributes {stable_mosaic.version = 11 : i64} {
  func.func @_nan_mse_kernel(%arg0: i32, %arg1: i32, %arg2: memref<16x128xf32, #tpu.memory_space<vmem>>, %arg3: memref<16x128xf32, #tpu.memory_space<vmem>>, %arg4: memref<1x8x128xf32, #tpu.memory_space<vmem>>, %arg5: memref<1x8x128xi32, #tpu.memory_space<vmem>>) attributes {dimension_semantics = [#tpu.dimension_semantics<parallel>, #tpu.dimension_semantics<arbitrary>], iteration_bounds = array<i64: 1, 1>, scalar_prefetch = 0 : i64, scratch_operands = 0 : i64, tpu.core_type = #tpu.core_type<tc>, window_params = [{transform_indices = @transform_0, window_bounds = array<i64: 16, 128>}, {transform_indices = @transform_1, window_bounds = array<i64: 16, 128>}, {transform_indices = @transform_2, window_bounds = array<i64: 1, 8, 128>}, {transform_indices = @transform_3, window_bounds = array<i64: 1, 8, 128>}]} {
    %c0_i32 = arith.constant 0 : i32
    %0 = arith.cmpi eq, %arg1, %c0_i32 : i32
    %1 = arith.extui %0 : i1 to i32
    %c0_i32_0 = arith.constant 0 : i32
    %2 = arith.cmpi ne, %1, %c0_i32_0 : i32
    scf.if %2 {
      %cst_18 = arith.constant 0.000000e+00 : f32
      %23 = vector.broadcast %cst_18 : f32 to vector<1x8x128xf32>
      %c0_19 = arith.constant 0 : index
      %c0_20 = arith.constant 0 : index
      %c0_21 = arith.constant 0 : index
      %24 = vector.load %arg4[%c0_19, %c0_20, %c0_21] : memref<1x8x128xf32, #tpu.memory_space<vmem>>, vector<1x8x128xf32>
      tpu.vector_store %arg4[%c0_19, %c0_20, %c0_21], %23 {strides = array<i32>} : memref<1x8x128xf32, #tpu.memory_space<vmem>>, vector<1x8x128xf32>,
      %c0_i32_22 = arith.constant 0 : i32
      %25 = vector.broadcast %c0_i32_22 : i32 to vector<1x8x128xi32>
      %c0_23 = arith.constant 0 : index
      %c0_24 = arith.constant 0 : index
      %c0_25 = arith.constant 0 : index
      %26 = vector.load %arg5[%c0_23, %c0_24, %c0_25] : memref<1x8x128xi32, #tpu.memory_space<vmem>>, vector<1x8x128xi32>
      tpu.vector_store %arg5[%c0_23, %c0_24, %c0_25], %25 {strides = array<i32>} : memref<1x8x128xi32, #tpu.memory_space<vmem>>, vector<1x8x128xi32>,
    } else {
    }
    %c0 = arith.constant 0 : index
    %c0_1 = arith.constant 0 : index
    %3 = vector.load %arg3[%c0, %c0_1] : memref<16x128xf32, #tpu.memory_space<vmem>>, vector<16x128xf32>
    %c0_2 = arith.constant 0 : index
    %c0_3 = arith.constant 0 : index
    %4 = vector.load %arg2[%c0_2, %c0_3] : memref<16x128xf32, #tpu.memory_space<vmem>>, vector<16x128xf32>
    %5 = arith.cmpf oeq, %3, %3 : vector<16x128xf32>
    %6 = arith.subf %4, %3 : vector<16x128xf32>
    %cst = arith.constant 0.000000e+00 : f32
    %7 = vector.broadcast %cst : f32 to vector<16x128xf32>
    %8 = arith.select %5, %6, %7 : vector<16x128xi1>, vector<16x128xf32>
    %9 = arith.mulf %8, %8 : vector<16x128xf32>
    %c0_4 = arith.constant 0 : index
    %c0_5 = arith.constant 0 : index
    %c0_6 = arith.constant 0 : index
    %10 = vector.load %arg4[%c0_4, %c0_5, %c0_6] : memref<1x8x128xf32, #tpu.memory_space<vmem>>, vector<1x8x128xf32>
    %11 = vector.shape_cast %9 : vector<16x128xf32> to vector<2x8x128xf32>
    %cst_7 = arith.constant dense<0.000000e+00> : vector<8x128xf32>
    %12 = vector.multi_reduction <add>, %11, %cst_7 [0] : vector<2x8x128xf32> to vector<8x128xf32>
    %13 = vector.shape_cast %12 : vector<8x128xf32> to vector<1x8x128xf32>
    %14 = arith.addf %10, %13 : vector<1x8x128xf32>
    %c0_8 = arith.constant 0 : index
    %c0_9 = arith.constant 0 : index
    %c0_10 = arith.constant 0 : index
    %15 = vector.load %arg4[%c0_8, %c0_9, %c0_10] : memref<1x8x128xf32, #tpu.memory_space<vmem>>, vector<1x8x128xf32>
    tpu.vector_store %arg4[%c0_8, %c0_9, %c0_10], %14 {strides = array<i32>} : memref<1x8x128xf32, #tpu.memory_space<vmem>>, vector<1x8x128xf32>,
    %c0_11 = arith.constant 0 : index
    %c0_12 = arith.constant 0 : index
    %c0_13 = arith.constant 0 : index
    %16 = vector.load %arg5[%c0_11, %c0_12, %c0_13] : memref<1x8x128xi32, #tpu.memory_space<vmem>>, vector<1x8x128xi32>
    %17 = arith.extui %5 : vector<16x128xi1> to vector<16x128xi32>
    %18 = vector.shape_cast %17 : vector<16x128xi32> to vector<2x8x128xi32>
    %cst_14 = arith.constant dense<0> : vector<8x128xi32>
    %19 = vector.multi_reduction <add>, %18, %cst_14 [0] : vector<2x8x128xi32> to vector<8x128xi32>
    %20 = vector.shape_cast %19 : vector<8x128xi32> to vector<1x8x128xi32>
    %21 = arith.addi %16, %20 : vector<1x8x128xi32>
    %c0_15 = arith.constant 0 : index
    %c0_16 = arith.constant 0 : index
    %c0_17 = arith.constant 0 : index
    %22 = vector.load %arg5[%c0_15, %c0_16, %c0_17] : memref<1x8x128xi32, #tpu.memory_space<vmem>>, vector<1x8x128xi32>
    tpu.vector_store %arg5[%c0_15, %c0_16, %c0_17], %21 {strides = array<i32>} : memref<1x8x128xi32, #tpu.memory_space<vmem>>, vector<1x8x128xi32>,
    return
  }
  func.func @transform_0(%arg0: i32, %arg1: i32) -> (i32, i32) {
    %c1_i32 = arith.constant 1 : i32
    %0 = arith.muli %arg0, %c1_i32 : i32
    %1 = arith.addi %0, %arg1 : i32
    %c0_i32 = arith.constant 0 : i32
    %2 = arith.minsi %1, %c0_i32 : i32
    %c0_i32_0 = arith.constant 0 : i32
    %c0_i32_1 = arith.constant 0 : i32
    return %2, %c0_i32_0 : i32, i32
  }
  func.func @transform_1(%arg0: i32, %arg1: i32) -> (i32, i32) {
    %c1_i32 = arith.constant 1 : i32
    %0 = arith.muli %arg0, %c1_i32 : i32
    %1 = arith.addi %0, %arg1 : i32
    %c0_i32 = arith.constant 0 : i32
    %2 = arith.minsi %1, %c0_i32 : i32
    %c0_i32_0 = arith.constant 0 : i32
    %c0_i32_1 = arith.constant 0 : i32
    return %2, %c0_i32_0 : i32, i32
  }
  func.func @transform_2(%arg0: i32, %arg1: i32) -> (i32, i32, i32) {
    %c0_i32 = arith.constant 0 : i32
    %c0_i32_0 = arith.constant 0 : i32
    %c0_i32_1 = arith.constant 0 : i32
    return %arg0, %c0_i32, %c0_i32_0 : i32, i32, i32
  }
  func.func @transform_3(%arg0: i32, %arg1: i32) -> (i32, i32, i32) {
    %c0_i32 = arith.constant 0 : i32
    %c0_i32_0 = arith.constant 0 : i32
    %c0_i32_1 = arith.constant 0 : i32
    return %arg0, %c0_i32, %c0_i32_0 : i32, i32, i32
  }
}

</mosaic_0001>

<bundles_post_ra>
// kernel: tpu_custom_call.1
= control target key start
LH: loop header
LB: loop body
LE: loop exit
PB: predicated region body
PF: predicated region fallthrough
CT: control target
= control target key end

     0   :  { %9 = vsyncpa [#allocation3], 0  ;;  %s304_s0 = inlined_call_operand.hbm [shape: f32[16,128], index: 0, kind: input, shape index: {}]   ;;  %s305_s1 = inlined_call_operand.hbm [shape: f32[16,128], index: 1, kind: input, shape index: {}]   ;;  %s306_s2 = inlined_call_operand.hbm [shape: f32[1,8,128], index: 2, kind: output, shape index: {0}]   ;;  %s307_s3 = inlined_call_operand.hbm [shape: s32[1,8,128], index: 3, kind: output, shape index: {1}]  }
   0x1   :  { %10 = vsyncpa [#allocation6], 0 }
   0x2   :  { %11 = vsyncpa [#allocation4], 0 }
   0x3   :  { %12 = vsyncpa [#allocation9], 0  ;;  %s229_s12 = smov [#allocation2]   ;;  %s133_s16 = scalar_lea.hbm %s304_s0, 256 }
   0x4   :  { %s24_s13 = sshll.u32 %s229_s12, 4  ;;  %p134_p0 = scmp.ne.s32.totalorder %s304_s0, %s133_s16  ;;  %s25_s13 = int_to_ptr.vmem [resolvable:$true] %s24_s13 }
   0x5   :  { %p137_p1 = scmp.lt.u32.totalorder %s133_s16, %s304_s0 }
   0x7   :  { %p139_p2 = pnand %p137_p1, %p134_p0 }
   0x9   :  { %142 = shalt.err (!%p139_p2)
}
   0xa   :  { %s143_s21 = scalar_lea.vmem %s25_s13, 256  ;;  %p148_p4 = scmp.lt.s32.totalorder %s25_s13, %s25_s13 }
   0xb   :  { %p144_p3 = scmp.ne.s32.totalorder %s25_s13, %s143_s21  ;;  %p149_p5 = scmp.lt.s32.totalorder %s143_s21, %s143_s21 }
   0xd   :  { %p150_p6 = por %p149_p5, %p148_p4 }
   0xf   :  { %p151_p7 = pnand %p150_p6, %p144_p3 }
  0x11   :  { %154 = shalt.err (!%p151_p7)
}
  0x12   :  { %s230_s22 = smov 128   ;;  %s231_s23 = smov 8  }
  0x13   :  { %30 = dma.hbm_to_vmem [thread:$0]  %s304_s0, 256, %s25_s13, [#allocation3], %s230_s22, %s230_s22, %s231_s23  }
  0x14   :  { %s232_s26 = smov [#allocation5]   ;;  %s155_s30 = scalar_lea.hbm %s305_s1, 256 }
  0x15   :  { %s42_s27 = sshll.u32 %s232_s26, 4  ;;  %p156_p8 = scmp.ne.s32.totalorder %s305_s1, %s155_s30  ;;  %s43_s27 = int_to_ptr.vmem [resolvable:$true] %s42_s27 }
  0x16   :  { %p159_p9 = scmp.lt.u32.totalorder %s155_s30, %s305_s1 }
  0x18   :  { %p161_p10 = pnand %p159_p9, %p156_p8 }
  0x1a   :  { %164 = shalt.err (!%p161_p10)
}
  0x1b   :  { %s165_s8 = scalar_lea.vmem %s43_s27, 256  ;;  %p170_p12 = scmp.lt.s32.totalorder %s43_s27, %s43_s27 }
  0x1c   :  { %p166_p11 = scmp.ne.s32.totalorder %s43_s27, %s165_s8  ;;  %p171_p13 = scmp.lt.s32.totalorder %s165_s8, %s165_s8 }
  0x1e   :  { %p172_p0 = por %p171_p13, %p170_p12 }
  0x20   :  { %p173_p1 = pnand %p172_p0, %p166_p11 }
  0x22   :  { %176 = shalt.err (!%p173_p1)
}
  0x23   :  { %48 = dma.hbm_to_vmem [thread:$0]  %s305_s1, 256, %s43_s27, [#allocation6], %s230_s22, %s230_s22, %s231_s23  }
  0x24   :  { %221 = dma.done.wait [#allocation3], 256  }
  0x25   :  { %222 = vsyncadd [#allocation3], 4294967040 }
  0x26   :  { %223 = dma.done.wait [#allocation6], 256  }
  0x27   :  { %224 = vsyncadd [#allocation6], 4294967040  ;;  %v69_v0 = vld [vmem:[#allocation5] sm:$0xff]  ;;  %v70_v1 = vld [vmem:[#allocation5 + $0x8] sm:$0xff]  ;;  %v233_v6 = vmov 0   ;;  %s234_s10 = smov [#allocation8]  }
  0x28   :  { %v71_v2 = vld [vmem:[#allocation2] sm:$0xff]  ;;  %v72_v3 = vld [vmem:[#allocation2 + $0x8] sm:$0xff]  ;;  %vm73_vm0 = vcmp.eq.f32.partialorder %v69_v0, %v69_v0  ;;  %vm74_vm1 = vcmp.eq.f32.partialorder %v70_v1, %v70_v1  ;;  %s107_s11 = sshll.u32 %s234_s10, 4  ;;  %s235_s1 = smov [#allocation7]   ;;  %s108_s11 = int_to_ptr.vmem [resolvable:$true] %s107_s11 }
  0x29   :  { %v75_v4 = vsub.f32 %v71_v2, %v69_v0  ;;  %v76_v5 = vsub.f32 %v72_v3, %v70_v1  ;;  %v86_v7 = vsel %vm73_vm0, 1, %v233_v6  ;;  %v87_v8 = vsel %vm74_vm1, 1, %v233_v6  ;;  %s97_s12 = sshll.u32 %s235_s1, 4  ;;  %s177_s13 = scalar_lea.vmem %s108_s11, 128  ;;  %s98_s12 = int_to_ptr.vmem [resolvable:$true] %s97_s12 }
  0x2a   :  { %v88_v10 = vadd.s32 %v87_v8, %v86_v7  ;;  %p178_p2 = scmp.ne.s32.totalorder %s108_s11, %s177_s13  ;;  %p182_p3 = scmp.lt.s32.totalorder %s108_s11, %s108_s11 }
  0x2b   :  { %v77_v9 = vsel %vm73_vm0, %v75_v4, 0.0  ;;  %v78_v11 = vsel %vm74_vm1, %v76_v5, 0.0  ;;  %p183_p4 = scmp.lt.s32.totalorder %s177_s13, %s177_s13 }
  0x2c   :  { %v79_v12 = vmul.f32 %v77_v9, %v77_v9  ;;  %v80_v13 = vmul.f32 %v78_v11, %v78_v11  ;;  %90 = vst [vmem:[#allocation8] sm:$0xff] %v88_v10 }
  0x2d   :  { %p184_p5 = por %p183_p4, %p182_p3 }
  0x2e   :  { %v82_v14 = vadd.f32 %v80_v13, %v79_v12 }
  0x2f   :  { %p185_p6 = pnand %p184_p5, %p178_p2 }
  0x31   :  { %188 = shalt.err (!%p185_p6)
}
  0x32   :  { %s189_s16 = scalar_lea.hbm %s307_s3, 128 }
  0x33   :  { %p190_p7 = scmp.ne.s32.totalorder %s307_s3, %s189_s16  ;;  %p193_p8 = scmp.lt.u32.totalorder %s189_s16, %s307_s3 }
  0x35   :  { %p195_p9 = pnand %p193_p8, %p190_p7 }
  0x37   :  { %198 = shalt.err (!%p195_p9)
}
  0x38   :  { %110 = dma.vmem_to_hbm [thread:$0]  %s108_s11, 128, %s307_s3, [#allocation9]   ;;  %84 = vst [vmem:[#allocation7] sm:$0xff] %v82_v14 }
  0x39   :  { %s199_s23 = scalar_lea.vmem %s98_s12, 128  ;;  %p204_p11 = scmp.lt.s32.totalorder %s98_s12, %s98_s12 }
  0x3a   :  { %p200_p10 = scmp.ne.s32.totalorder %s98_s12, %s199_s23  ;;  %p205_p12 = scmp.lt.s32.totalorder %s199_s23, %s199_s23 }
  0x3c   :  { %p206_p13 = por %p205_p12, %p204_p11 }
  0x3e   :  { %p207_p0 = pnand %p206_p13, %p200_p10 }
  0x40   :  { %210 = shalt.err (!%p207_p0)
}
  0x41   :  { %s211_s26 = scalar_lea.hbm %s306_s2, 128 }
  0x42   :  { %p212_p1 = scmp.ne.s32.totalorder %s306_s2, %s211_s26  ;;  %p215_p2 = scmp.lt.u32.totalorder %s211_s26, %s306_s2 }
  0x44   :  { %p217_p3 = pnand %p215_p2, %p212_p1 }
  0x46   :  { %220 = shalt.err (!%p217_p3)
}
  0x47   :  { %100 = dma.vmem_to_hbm [thread:$0]  %s98_s12, 128, %s306_s2, [#allocation4]  }
  0x48   :  { %225 = dma.done.wait [#allocation4], 128  }
  0x49   :  { %226 = vsyncadd [#allocation4], 4294967168 }
  0x4a   :  { %227 = dma.done.wait [#allocation9], 128  }
  0x4b   :  { %228 = vsyncadd [#allocation9], 4294967168 }
  0x4c   :  { %117 = vsyncpa [#allocation3], 1 }
  0x4d   :  { %118 = vsyncpa [#allocation6], 1 }
  0x4e   :  { %119 = vsyncpa [#allocation4], 1 }
  0x4f   :  { %120 = vsyncpa [#allocation9], 1 }

</bundles_post_ra>
